<compile_context>
chip_gen: v6e
topology: v6e:2x2x1
jax: 0.10.0
libtpu: 0.0.40
codegen_flags: <defaults>
</compile_context>

<pallas_src>
import functools

import jax
import jax.numpy as jnp
from jax.experimental import pallas as pl
from jax.experimental.pallas import tpu as pltpu


def cnn_regressor_kernel(x_ref, u0_ref, u1_ref,
                         w_r0, b_r0, w_r1, b_r1,          # RBM encoder params
                         w1, b1, w2, b2, w3, b3, w4_row, b4,  # regressor params
                         o_ref):
    # ---- encoder: for rbm in encoder: _, x = rbm.sample_h(x) ----
    x = x_ref[...].astype(jnp.bfloat16)                    # bf16 into the MXU, f32 accumulate
    p0 = jax.nn.sigmoid(
        jnp.dot(x, w_r0[...], preferred_element_type=jnp.float32) + b_r0[...])
    h = (u0_ref[...] < p0).astype(jnp.bfloat16)            # bernoulli(p_h): exact 0/1, lossless bf16

    p1 = jax.nn.sigmoid(
        jnp.dot(h, w_r1[...], preferred_element_type=jnp.float32) + b_r1[...])
    h = (u1_ref[...] < p1).astype(jnp.bfloat16)

    # ---- regressor: (Linear -> ReLU) x3, final Linear(32, 1) as a VPU reduction ----
    a = jnp.maximum(
        jnp.dot(h, w1[...], preferred_element_type=jnp.float32) + b1[...], 0.0)
    a = jnp.maximum(
        jnp.dot(a.astype(jnp.bfloat16), w2[...],
                preferred_element_type=jnp.float32) + b2[...], 0.0)
    a = jnp.maximum(
        jnp.dot(a.astype(jnp.bfloat16), w3[...],
                preferred_element_type=jnp.float32) + b3[...], 0.0)
    # N=1 matmul would waste an MXU pass; multiply + lane reduce uses VPU/XLU slack.
    o_ref[...] = jnp.sum(a * w4_row[...], axis=-1, keepdims=True) + b4[...]


def prepare_params(params):
    """Do the torch (out,in) -> (in,out) transposes / bf16 casts ONCE, outside the hot path."""
    def wt(w):   # matmul weights: transpose + bf16 for single-pass MXU
        return jnp.asarray(w, jnp.float32).T.astype(jnp.bfloat16)

    def br(b):   # biases stay f32 (added to f32 accumulators), 2D VMEM tile
        return jnp.asarray(b, jnp.float32).reshape(1, -1)

    return (
        wt(params["rbm0_w"]), br(params["rbm0_hb"]),
        wt(params["rbm1_w"]), br(params["rbm1_hb"]),
        wt(params["fc1_w"]), br(params["fc1_b"]),
        wt(params["fc2_w"]), br(params["fc2_b"]),
        wt(params["fc3_w"]), br(params["fc3_b"]),
        # final Linear(32, 1): keep as a (1, 32) f32 row for the VPU reduction
        jnp.asarray(params["fc4_w"], jnp.float32).reshape(1, -1),
        jnp.asarray(params["fc4_b"], jnp.float32).reshape(1, 1),
    )


@functools.partial(jax.jit, static_argnames=("tile_b",))
def _forward(x, u0, u1, prepared, *, tile_b):
    B_pad, visible = x.shape
    h0 = u0.shape[1]
    h1 = u1.shape[1]
    n_tiles = B_pad // tile_b

    def resident(arr):  # full-array block, pinned to (0, 0): stays in VMEM across grid steps
        return pl.BlockSpec(arr.shape, lambda i: (0, 0))

    in_specs = [
        pl.BlockSpec((tile_b, visible), lambda i: (i, 0)),   # x batch tile
        pl.BlockSpec((tile_b, h0), lambda i: (i, 0)),        # uniform noise, RBM 0
        pl.BlockSpec((tile_b, h1), lambda i: (i, 0)),        # uniform noise, RBM 1
    ] + [resident(p) for p in prepared]

    return pl.pallas_call(
        cnn_regressor_kernel,
        out_shape=jax.ShapeDtypeStruct((B_pad, 1), jnp.float32),
        grid=(n_tiles,),
        in_specs=in_specs,
        out_specs=pl.BlockSpec((tile_b, 1), lambda i: (i, 0)),
        compiler_params=pltpu.CompilerParams(
            dimension_semantics=("parallel",)),   # shard batch tiles across TCs on v7x
    )(x, u0, u1, *prepared)


def _round_up(x, m):
    return ((x + m - 1) // m) * m


def cnn_regressor(x, params, key, *, tile_b=256):
    """x: (B, visible) float32. params: torch-layout dict. key: PRNG key for Bernoulli draws."""
    x = jnp.asarray(x, jnp.float32)
    B, _ = x.shape
    h0 = params["rbm0_w"].shape[0]
    h1 = params["rbm1_w"].shape[0]

    # Batch tile: multiple of 8 sublanes, no larger than the (padded) batch.
    tile_b = min(tile_b, _round_up(B, 8))
    B_pad = _round_up(B, tile_b)
    if B_pad != B:
        x = jnp.pad(x, ((0, B_pad - B), (0, 0)))

    # Bernoulli randomness generated host-side (portable, deterministic per key).
    k0, k1 = jax.random.split(key)
    u0 = jax.random.uniform(k0, (B_pad, h0), jnp.float32)
    u1 = jax.random.uniform(k1, (B_pad, h1), jnp.float32)

    prepared = prepare_params(params)
    y = _forward(x, u0, u1, prepared, tile_b=tile_b)
    return y[:B]


def _init_linear(key, fan_in, fan_out):
    """PyTorch nn.Linear default init: U(-1/sqrt(fan_in), 1/sqrt(fan_in))."""
    kw, kb = jax.random.split(key)
    bound = 1.0 / (fan_in ** 0.5)
    w = jax.random.uniform(kw, (fan_out, fan_in), jnp.float32, -bound, bound)
    b = jax.random.uniform(kb, (fan_out,), jnp.float32, -bound, bound)
    return w, b


if __name__ == "__main__":
    key = jax.random.PRNGKey(0)
    keys = jax.random.split(key, 8)

    # Small, forward-consistent shapes: last RBM hidden = 32 feeds Linear(32, 128).
    batch, visible, h0, h1 = 8, 64, 48, 32

    params = {}
    # RBM encoder: W is (hidden, visible), hidden bias (hidden,)
    params["rbm0_w"] = 0.1 * jax.random.normal(keys[0], (h0, visible), jnp.float32)
    params["rbm0_hb"] = jnp.zeros((h0,), jnp.float32)
    params["rbm1_w"] = 0.1 * jax.random.normal(keys[1], (h1, h0), jnp.float32)
    params["rbm1_hb"] = jnp.zeros((h1,), jnp.float32)
    # regressor: Linear(32,128) -> Linear(128,64) -> Linear(64,32) -> Linear(32,1)
    params["fc1_w"], params["fc1_b"] = _init_linear(keys[2], 32, 128)
    params["fc2_w"], params["fc2_b"] = _init_linear(keys[3], 128, 64)
    params["fc3_w"], params["fc3_b"] = _init_linear(keys[4], 64, 32)
    params["fc4_w"], params["fc4_b"] = _init_linear(keys[5], 32, 1)

    x = jax.random.uniform(keys[6], (batch, visible), jnp.float32)  # "visible" units in [0, 1]

    y = cnn_regressor(x, params, keys[7])
    y = jax.block_until_ready(y)
    assert y.shape == (batch, 1) and y.dtype == jnp.float32
    print("KERNEL_OK")
</pallas_src>

<mosaic_0001>
module attributes {stable_mosaic.version = 11 : i64} {
  func.func @cnn_regressor_kernel(%arg0: i32, %arg1: memref<8x64xf32, #tpu.memory_space<vmem>>, %arg2: memref<8x48xf32, #tpu.memory_space<vmem>>, %arg3: memref<8x32xf32, #tpu.memory_space<vmem>>, %arg4: memref<64x48xbf16, #tpu.memory_space<vmem>>, %arg5: memref<1x48xf32, #tpu.memory_space<vmem>>, %arg6: memref<48x32xbf16, #tpu.memory_space<vmem>>, %arg7: memref<1x32xf32, #tpu.memory_space<vmem>>, %arg8: memref<32x128xbf16, #tpu.memory_space<vmem>>, %arg9: memref<1x128xf32, #tpu.memory_space<vmem>>, %arg10: memref<128x64xbf16, #tpu.memory_space<vmem>>, %arg11: memref<1x64xf32, #tpu.memory_space<vmem>>, %arg12: memref<64x32xbf16, #tpu.memory_space<vmem>>, %arg13: memref<1x32xf32, #tpu.memory_space<vmem>>, %arg14: memref<1x32xf32, #tpu.memory_space<vmem>>, %arg15: memref<1x1xf32, #tpu.memory_space<vmem>>, %arg16: memref<8x1xf32, #tpu.memory_space<vmem>>) attributes {dimension_semantics = [#tpu.dimension_semantics<parallel>], iteration_bounds = array<i64: 1>, scalar_prefetch = 0 : i64, scratch_operands = 0 : i64, tpu.core_type = #tpu.core_type<tc>, window_params = [{transform_indices = @transform_0, window_bounds = array<i64: 8, 64>}, {transform_indices = @transform_1, window_bounds = array<i64: 8, 48>}, {transform_indices = @transform_2, window_bounds = array<i64: 8, 32>}, {pipeline_mode = #tpu.pipeline_mode<synchronous>, transform_indices = @transform_3, window_bounds = array<i64: 64, 48>}, {pipeline_mode = #tpu.pipeline_mode<synchronous>, transform_indices = @transform_4, window_bounds = array<i64: 1, 48>}, {pipeline_mode = #tpu.pipeline_mode<synchronous>, transform_indices = @transform_5, window_bounds = array<i64: 48, 32>}, {pipeline_mode = #tpu.pipeline_mode<synchronous>, transform_indices = @transform_6, window_bounds = array<i64: 1, 32>}, {pipeline_mode = #tpu.pipeline_mode<synchronous>, transform_indices = @transform_7, window_bounds = array<i64: 32, 128>}, {pipeline_mode = #tpu.pipeline_mode<synchronous>, transform_indices = @transform_8, window_bounds = array<i64: 1, 128>}, {pipeline_mode = #tpu.pipeline_mode<synchronous>, transform_indices = @transform_9, window_bounds = array<i64: 128, 64>}, {pipeline_mode = #tpu.pipeline_mode<synchronous>, transform_indices = @transform_10, window_bounds = array<i64: 1, 64>}, {pipeline_mode = #tpu.pipeline_mode<synchronous>, transform_indices = @transform_11, window_bounds = array<i64: 64, 32>}, {pipeline_mode = #tpu.pipeline_mode<synchronous>, transform_indices = @transform_12, window_bounds = array<i64: 1, 32>}, {pipeline_mode = #tpu.pipeline_mode<synchronous>, transform_indices = @transform_13, window_bounds = array<i64: 1, 32>}, {pipeline_mode = #tpu.pipeline_mode<synchronous>, transform_indices = @transform_14, window_bounds = array<i64: 1, 1>}, {transform_indices = @transform_15, window_bounds = array<i64: 8, 1>}]} {
    %c0 = arith.constant 0 : index
    %c0_0 = arith.constant 0 : index
    %0 = vector.load %arg1[%c0, %c0_0] : memref<8x64xf32, #tpu.memory_space<vmem>>, vector<8x64xf32>
    %1 = arith.truncf %0 : vector<8x64xf32> to vector<8x64xbf16>
    %c0_1 = arith.constant 0 : index
    %c0_2 = arith.constant 0 : index
    %2 = vector.load %arg4[%c0_1, %c0_2] : memref<64x48xbf16, #tpu.memory_space<vmem>>, vector<64x48xbf16>
    %cst = arith.constant dense<0.000000e+00> : vector<8x48xf32>
    %3 = tpu.matmul %1, %2, %cst {dimension_numbers = #tpu.dot_dimension_numbers<[1], [0], [0], [1], [0, 0, 1, 1], [], []>} : vector<8x64xbf16>, vector<64x48xbf16>, vector<8x48xf32> -> vector<8x48xf32>
    %c0_3 = arith.constant 0 : index
    %c0_4 = arith.constant 0 : index
    %4 = vector.load %arg5[%c0_3, %c0_4] : memref<1x48xf32, #tpu.memory_space<vmem>>, vector<1x48xf32>
    %5 = vector.broadcast %4 : vector<1x48xf32> to vector<8x48xf32>
    %6 = arith.addf %3, %5 : vector<8x48xf32>
    %7 = arith.negf %6 : vector<8x48xf32>
    %8 = math.exp %7 : vector<8x48xf32>
    %cst_5 = arith.constant 1.000000e+00 : f32
    %9 = vector.broadcast %cst_5 : f32 to vector<8x48xf32>
    %10 = arith.addf %9, %8 : vector<8x48xf32>
    %11 = arith.divf %9, %10 : vector<8x48xf32>
    %c0_6 = arith.constant 0 : index
    %c0_7 = arith.constant 0 : index
    %12 = vector.load %arg2[%c0_6, %c0_7] : memref<8x48xf32, #tpu.memory_space<vmem>>, vector<8x48xf32>
    %13 = arith.cmpf olt, %12, %11 : vector<8x48xf32>
    %14 = arith.extui %13 : vector<8x48xi1> to vector<8x48xi32>
    %15 = arith.sitofp %14 : vector<8x48xi32> to vector<8x48xf32>
    %16 = arith.truncf %15 : vector<8x48xf32> to vector<8x48xbf16>
    %c0_8 = arith.constant 0 : index
    %c0_9 = arith.constant 0 : index
    %17 = vector.load %arg6[%c0_8, %c0_9] : memref<48x32xbf16, #tpu.memory_space<vmem>>, vector<48x32xbf16>
    %cst_10 = arith.constant dense<0.000000e+00> : vector<8x32xf32>
    %18 = tpu.matmul %16, %17, %cst_10 {dimension_numbers = #tpu.dot_dimension_numbers<[1], [0], [0], [1], [0, 0, 1, 1], [], []>} : vector<8x48xbf16>, vector<48x32xbf16>, vector<8x32xf32> -> vector<8x32xf32>
    %c0_11 = arith.constant 0 : index
    %c0_12 = arith.constant 0 : index
    %19 = vector.load %arg7[%c0_11, %c0_12] : memref<1x32xf32, #tpu.memory_space<vmem>>, vector<1x32xf32>
    %20 = vector.broadcast %19 : vector<1x32xf32> to vector<8x32xf32>
    %21 = arith.addf %18, %20 : vector<8x32xf32>
    %22 = arith.negf %21 : vector<8x32xf32>
    %23 = math.exp %22 : vector<8x32xf32>
    %cst_13 = arith.constant 1.000000e+00 : f32
    %24 = vector.broadcast %cst_13 : f32 to vector<8x32xf32>
    %25 = arith.addf %24, %23 : vector<8x32xf32>
    %26 = arith.divf %24, %25 : vector<8x32xf32>
    %c0_14 = arith.constant 0 : index
    %c0_15 = arith.constant 0 : index
    %27 = vector.load %arg3[%c0_14, %c0_15] : memref<8x32xf32, #tpu.memory_space<vmem>>, vector<8x32xf32>
    %28 = arith.cmpf olt, %27, %26 : vector<8x32xf32>
    %29 = arith.extui %28 : vector<8x32xi1> to vector<8x32xi32>
    %30 = arith.sitofp %29 : vector<8x32xi32> to vector<8x32xf32>
    %31 = arith.truncf %30 : vector<8x32xf32> to vector<8x32xbf16>
    %c0_16 = arith.constant 0 : index
    %c0_17 = arith.constant 0 : index
    %32 = vector.load %arg8[%c0_16, %c0_17] : memref<32x128xbf16, #tpu.memory_space<vmem>>, vector<32x128xbf16>
    %cst_18 = arith.constant dense<0.000000e+00> : vector<8x128xf32>
    %33 = tpu.matmul %31, %32, %cst_18 {dimension_numbers = #tpu.dot_dimension_numbers<[1], [0], [0], [1], [0, 0, 1, 1], [], []>} : vector<8x32xbf16>, vector<32x128xbf16>, vector<8x128xf32> -> vector<8x128xf32>
    %c0_19 = arith.constant 0 : index
    %c0_20 = arith.constant 0 : index
    %34 = vector.load %arg9[%c0_19, %c0_20] : memref<1x128xf32, #tpu.memory_space<vmem>>, vector<1x128xf32>
    %35 = vector.broadcast %34 : vector<1x128xf32> to vector<8x128xf32>
    %36 = arith.addf %33, %35 : vector<8x128xf32>
    %cst_21 = arith.constant 0.000000e+00 : f32
    %37 = vector.broadcast %cst_21 : f32 to vector<8x128xf32>
    %38 = arith.maximumf %36, %37 : vector<8x128xf32>
    %39 = arith.truncf %38 : vector<8x128xf32> to vector<8x128xbf16>
    %c0_22 = arith.constant 0 : index
    %c0_23 = arith.constant 0 : index
    %40 = vector.load %arg10[%c0_22, %c0_23] : memref<128x64xbf16, #tpu.memory_space<vmem>>, vector<128x64xbf16>
    %cst_24 = arith.constant dense<0.000000e+00> : vector<8x64xf32>
    %41 = tpu.matmul %39, %40, %cst_24 {dimension_numbers = #tpu.dot_dimension_numbers<[1], [0], [0], [1], [0, 0, 1, 1], [], []>} : vector<8x128xbf16>, vector<128x64xbf16>, vector<8x64xf32> -> vector<8x64xf32>
    %c0_25 = arith.constant 0 : index
    %c0_26 = arith.constant 0 : index
    %42 = vector.load %arg11[%c0_25, %c0_26] : memref<1x64xf32, #tpu.memory_space<vmem>>, vector<1x64xf32>
    %43 = vector.broadcast %42 : vector<1x64xf32> to vector<8x64xf32>
    %44 = arith.addf %41, %43 : vector<8x64xf32>
    %cst_27 = arith.constant 0.000000e+00 : f32
    %45 = vector.broadcast %cst_27 : f32 to vector<8x64xf32>
    %46 = arith.maximumf %44, %45 : vector<8x64xf32>
    %47 = arith.truncf %46 : vector<8x64xf32> to vector<8x64xbf16>
    %c0_28 = arith.constant 0 : index
    %c0_29 = arith.constant 0 : index
    %48 = vector.load %arg12[%c0_28, %c0_29] : memref<64x32xbf16, #tpu.memory_space<vmem>>, vector<64x32xbf16>
    %cst_30 = arith.constant dense<0.000000e+00> : vector<8x32xf32>
    %49 = tpu.matmul %47, %48, %cst_30 {dimension_numbers = #tpu.dot_dimension_numbers<[1], [0], [0], [1], [0, 0, 1, 1], [], []>} : vector<8x64xbf16>, vector<64x32xbf16>, vector<8x32xf32> -> vector<8x32xf32>
    %c0_31 = arith.constant 0 : index
    %c0_32 = arith.constant 0 : index
    %50 = vector.load %arg13[%c0_31, %c0_32] : memref<1x32xf32, #tpu.memory_space<vmem>>, vector<1x32xf32>
    %51 = vector.broadcast %50 : vector<1x32xf32> to vector<8x32xf32>
    %52 = arith.addf %49, %51 : vector<8x32xf32>
    %cst_33 = arith.constant 0.000000e+00 : f32
    %53 = vector.broadcast %cst_33 : f32 to vector<8x32xf32>
    %54 = arith.maximumf %52, %53 : vector<8x32xf32>
    %c0_34 = arith.constant 0 : index
    %c0_35 = arith.constant 0 : index
    %55 = vector.load %arg14[%c0_34, %c0_35] : memref<1x32xf32, #tpu.memory_space<vmem>>, vector<1x32xf32>
    %56 = vector.broadcast %55 : vector<1x32xf32> to vector<8x32xf32>
    %57 = arith.mulf %54, %56 : vector<8x32xf32>
    %cst_36 = arith.constant dense<0.000000e+00> : vector<8xf32>
    %58 = vector.multi_reduction <add>, %57, %cst_36 [1] : vector<8x32xf32> to vector<8xf32>
    %59 = vector.shape_cast %58 : vector<8xf32> to vector<8x1xf32>
    %c0_37 = arith.constant 0 : index
    %c0_38 = arith.constant 0 : index
    %60 = vector.load %arg15[%c0_37, %c0_38] : memref<1x1xf32, #tpu.memory_space<vmem>>, vector<1x1xf32>
    %61 = vector.broadcast %60 : vector<1x1xf32> to vector<8x1xf32>
    %62 = arith.addf %59, %61 : vector<8x1xf32>
    %c0_39 = arith.constant 0 : index
    %c0_40 = arith.constant 0 : index
    %63 = vector.load %arg16[%c0_39, %c0_40] : memref<8x1xf32, #tpu.memory_space<vmem>>, vector<8x1xf32>
    tpu.vector_store %arg16[%c0_39, %c0_40], %62 {strides = array<i32>} : memref<8x1xf32, #tpu.memory_space<vmem>>, vector<8x1xf32>,
    return
  }
  func.func @transform_0(%arg0: i32) -> (i32, i32) {
    %c0_i32 = arith.constant 0 : i32
    %c0_i32_0 = arith.constant 0 : i32
    return %arg0, %c0_i32 : i32, i32
  }
  func.func @transform_1(%arg0: i32) -> (i32, i32) {
    %c0_i32 = arith.constant 0 : i32
    %c0_i32_0 = arith.constant 0 : i32
    return %arg0, %c0_i32 : i32, i32
  }
  func.func @transform_2(%arg0: i32) -> (i32, i32) {
    %c0_i32 = arith.constant 0 : i32
    %c0_i32_0 = arith.constant 0 : i32
    return %arg0, %c0_i32 : i32, i32
  }
  func.func @transform_3(%arg0: i32) -> (i32, i32) {
    %c0_i32 = arith.constant 0 : i32
    %c0_i32_0 = arith.constant 0 : i32
    %c0_i32_1 = arith.constant 0 : i32
    return %c0_i32, %c0_i32_0 : i32, i32
  }
  func.func @transform_4(%arg0: i32) -> (i32, i32) {
    %c0_i32 = arith.constant 0 : i32
    %c0_i32_0 = arith.constant 0 : i32
    %c0_i32_1 = arith.constant 0 : i32
    return %c0_i32, %c0_i32_0 : i32, i32
  }
  func.func @transform_5(%arg0: i32) -> (i32, i32) {
    %c0_i32 = arith.constant 0 : i32
    %c0_i32_0 = arith.constant 0 : i32
    %c0_i32_1 = arith.constant 0 : i32
    return %c0_i32, %c0_i32_0 : i32, i32
  }
  func.func @transform_6(%arg0: i32) -> (i32, i32) {
    %c0_i32 = arith.constant 0 : i32
    %c0_i32_0 = arith.constant 0 : i32
    %c0_i32_1 = arith.constant 0 : i32
    return %c0_i32, %c0_i32_0 : i32, i32
  }
  func.func @transform_7(%arg0: i32) -> (i32, i32) {
    %c0_i32 = arith.constant 0 : i32
    %c0_i32_0 = arith.constant 0 : i32
    %c0_i32_1 = arith.constant 0 : i32
    return %c0_i32, %c0_i32_0 : i32, i32
  }
  func.func @transform_8(%arg0: i32) -> (i32, i32) {
    %c0_i32 = arith.constant 0 : i32
    %c0_i32_0 = arith.constant 0 : i32
    %c0_i32_1 = arith.constant 0 : i32
    return %c0_i32, %c0_i32_0 : i32, i32
  }
  func.func @transform_9(%arg0: i32) -> (i32, i32) {
    %c0_i32 = arith.constant 0 : i32
    %c0_i32_0 = arith.constant 0 : i32
    %c0_i32_1 = arith.constant 0 : i32
    return %c0_i32, %c0_i32_0 : i32, i32
  }
  func.func @transform_10(%arg0: i32) -> (i32, i32) {
    %c0_i32 = arith.constant 0 : i32
    %c0_i32_0 = arith.constant 0 : i32
    %c0_i32_1 = arith.constant 0 : i32
    return %c0_i32, %c0_i32_0 : i32, i32
  }
  func.func @transform_11(%arg0: i32) -> (i32, i32) {
    %c0_i32 = arith.constant 0 : i32
    %c0_i32_0 = arith.constant 0 : i32
    %c0_i32_1 = arith.constant 0 : i32
    return %c0_i32, %c0_i32_0 : i32, i32
  }
  func.func @transform_12(%arg0: i32) -> (i32, i32) {
    %c0_i32 = arith.constant 0 : i32
    %c0_i32_0 = arith.constant 0 : i32
    %c0_i32_1 = arith.constant 0 : i32
    return %c0_i32, %c0_i32_0 : i32, i32
  }
  func.func @transform_13(%arg0: i32) -> (i32, i32) {
    %c0_i32 = arith.constant 0 : i32
    %c0_i32_0 = arith.constant 0 : i32
    %c0_i32_1 = arith.constant 0 : i32
    return %c0_i32, %c0_i32_0 : i32, i32
  }
  func.func @transform_14(%arg0: i32) -> (i32, i32) {
    %c0_i32 = arith.constant 0 : i32
    %c0_i32_0 = arith.constant 0 : i32
    %c0_i32_1 = arith.constant 0 : i32
    return %c0_i32, %c0_i32_0 : i32, i32
  }
  func.func @transform_15(%arg0: i32) -> (i32, i32) {
    %c0_i32 = arith.constant 0 : i32
    %c0_i32_0 = arith.constant 0 : i32
    return %arg0, %c0_i32 : i32, i32
  }
}

</mosaic_0001>

<bundles_post_ra>
// kernel: _forward.1
= control target key start
LH: loop header
LB: loop body
LE: loop exit
PB: predicated region body
PF: predicated region fallthrough
CT: control target
= control target key end

     0   :  { %v680_v0 = vmov 0.0   ;;  %vm681_vm0 = vmmov 0   ;;  %vm94_vm1 = vcmask 523264   ;;  %vm180_vm3 = vcmask 392192   ;;  %s895_s3 = inlined_call_operand.vmem [shape: bf16[64,48], index: 3, kind: input, shape index: {}]   ;;  %s896_s0 = inlined_call_operand.vmem [shape: f32[8,64], index: 0, kind: input, shape index: {}]   ;;  %s897_s5 = inlined_call_operand.vmem [shape: bf16[48,32], index: 5, kind: input, shape index: {}]   ;;  %s898_s4 = inlined_call_operand.vmem [shape: f32[1,48], index: 4, kind: input, shape index: {}]   ;;  %s899_s1 = inlined_call_operand.vmem [shape: f32[8,48], index: 1, kind: input, shape index: {}]   ;;  %s900_s7 = inlined_call_operand.vmem [shape: bf16[32,128], index: 7, kind: input, shape index: {}]   ;;  %s901_s9 = inlined_call_operand.vmem [shape: bf16[128,64], index: 9, kind: input, shape index: {}]   ;;  %s902_s6 = inlined_call_operand.vmem [shape: f32[1,32], index: 6, kind: input, shape index: {}]   ;;  %s903_s2 = inlined_call_operand.vmem [shape: f32[8,32], index: 2, kind: input, shape index: {}]   ;;  %s904_s11 = inlined_call_operand.vmem [shape: bf16[64,32], index: 11, kind: input, shape index: {}]   ;;  %s905_s8 = inlined_call_operand.vmem [shape: f32[1,128], index: 8, kind: input, shape index: {}]   ;;  %s906_s10 = inlined_call_operand.vmem [shape: f32[1,64], index: 10, kind: input, shape index: {}]   ;;  %s907_s14 = inlined_call_operand.<no memory space> [shape: f32[1,1], index: 14, kind: input, shape index: {}]   ;;  %s908_s12 = inlined_call_operand.vmem [shape: f32[1,32], index: 12, kind: input, shape index: {}]   ;;  %s909_s13 = inlined_call_operand.vmem [shape: f32[1,32], index: 13, kind: input, shape index: {}]   ;;  %s910_s15 = inlined_call_operand.vmem [shape: f32[8,1], index: 15, kind: output, shape index: {}]  }
   0x1   :  { %587 = vmatprep.subr.bf16.mxu0 %v680_v0  ;;  %v651_v1 = vld [vmem:[%s895_s3 + $0x18] sm:$0xff]   ;;  %595 = vmatprep.mubr.msk.bf16.mxu0 %vm681_vm0, %v680_v0  ;;  %v652_v2 = vld [vmem:[%s895_s3 + $0x10] sm:$0xff]   ;;  %v653_v3 = vld [vmem:[%s895_s3 + $0x8] sm:$0xff]   ;;  %vm258_vm5 = vcmask 261120   ;;  %vm519_vm6 = vcmask 7168  }
   0x2   :  { %599 = vmatprep.subr.bf16.mxu1 %v680_v0  ;;  %605 = vmatprep.mubr.msk.bf16.mxu1 %vm681_vm0, %v680_v0  ;;  %v654_v4 = vld [vmem:[%s895_s3] sm:$0xff]   ;;  %v655_v7 = vld [vmem:[%s897_s5 + $0x10] sm:$0xff]   ;;  %v656_v8 = vld [vmem:[%s897_s5 + $0x8] sm:$0xff]  }
   0x3   :  { %588 = vmatpush3.bf16.msra.mxu0 %v651_v1  ;;  %v53_v5 = vld [vmem:[%s896_s0] sm:$0xff]  ;;  %600 = vmatpush3.bf16.msra.mxu1 %v655_v7  ;;  %v658_v23 = vld [vmem:[%s900_s7 + $0x8] sm:$0xff]   ;;  %v660_v25 = vld [vmem:[%s901_s9 + $0x38] sm:$0xff]  }
   0x4   :  { %589 = vmatprep.subr.bf16.mxu0 %v680_v0  ;;  %v54_v6 = vpack.c.bf16 %v53_v5, %v53_v5  ;;  %601 = vmatprep.subr.bf16.mxu1 %v680_v0  ;;  %v657_v9 = vld [vmem:[%s897_s5] sm:$0xff]   ;;  %v661_v26 = vld [vmem:[%s901_s9 + $0x30] sm:$0xff]   ;;  %v662_v27 = vld [vmem:[%s901_s9 + $0x28] sm:$0xff]  }
   0x5   :  { %v525_v10 = vld [vmem:[%s898_s4] ss:$0 sm:$0xff]  ;;  %v664_v29 = vld [vmem:[%s901_s9 + $0x18] sm:$0xff]   ;;  %v665_v30 = vld [vmem:[%s901_s9 + $0x10] sm:$0xff]  }
   0x6   :  { %v144_v19 = vld [vmem:[%s899_s1] sm:$0xff]  ;;  %v666_v44 = vld [vmem:[%s901_s9 + $0x8] sm:$0xff]   ;;  %v668_v46 = vld [vmem:[%s904_s11 + $0x18] sm:$0xff]  }
   0x7   :  { %590 = vmatpush3.bf16.msra.mxu0 %v652_v2  ;;  %602 = vmatpush3.bf16.msra.mxu1 %v656_v8  ;;  %v659_v24 = vld [vmem:[%s900_s7] sm:$0xff]   ;;  %v669_v47 = vld [vmem:[%s904_s11 + $0x10] sm:$0xff]   ;;  %v670_v56 = vld [vmem:[%s904_s11 + $0x8] sm:$0xff]  }
   0x8   :  { %591 = vmatprep.subr.bf16.mxu0 %v680_v0  ;;  %603 = vmatprep.subr.bf16.mxu1 %v680_v0  ;;  %v663_v28 = vld [vmem:[%s901_s9 + $0x20] sm:$0xff]  }
   0x9   :  { %v533_v31 = vld [vmem:[%s902_s6] ss:$0 sm:$0xff] }
   0xa   :  { %v230_v40 = vld [vmem:[%s903_s2] sm:$0xff] }
   0xb   :  { %592 = vmatpush3.bf16.msra.mxu0 %v653_v3  ;;  %604 = vmatpush3.bf16.msra.mxu1 %v657_v9  ;;  %v667_v45 = vld [vmem:[%s901_s9] sm:$0xff]  }
   0xc   :  { %593 = vmatprep.subr.bf16.mxu0 %v680_v0  ;;  %609 = vmatprep.subr.bf16.mxu1 %v680_v0  ;;  %v540_v48 = vld [vmem:[%s905_s8] ss:$0 sm:$0xff] }
   0xd   :  { %v671_v57 = vld [vmem:[%s904_s11] sm:$0xff]  }
   0xe   :  { %v544_v58 = vld [vmem:[%s906_s10] ss:$0 sm:$0xff] }
   0xf   :  { %594 = vmatpush3.bf16.msra.mxu0 %v654_v4  ;;  %v553_v3 = vld [vmem:[%s908_s12] ss:$0 sm:$0xff] }
  0x10   :  { %617 = vmatprep.subr.bf16.mxu0 %v680_v0  ;;  %v559_v7 = vld [vmem:[%s909_s13] ss:$0 sm:$0xff] }
  0x12   :  { %596 = vmatmul.mubr.msk.bf16.vlgmr.msra.gmra.mxu0 %vm94_vm1, %v54_v6 }
  0x13   :  { %633 = vmatprep.mubr.msk.bf16.mxu0 %vm681_vm0, %v680_v0  ;;  %618 = vmatpush3.bf16.msra.mxu0 %v660_v25 }
  0x14   :  { %619 = vmatprep.subr.bf16.mxu0 %v680_v0 }
  0x17   :  { %620 = vmatpush3.bf16.msra.mxu0 %v661_v26 }
  0x18   :  { %621 = vmatprep.subr.bf16.mxu0 %v680_v0 }
  0x1b   :  { %622 = vmatpush3.bf16.msra.mxu0 %v662_v27 }
  0x1c   :  { %623 = vmatprep.subr.bf16.mxu0 %v680_v0 }
  0x1f   :  { %624 = vmatpush3.bf16.msra.mxu0 %v663_v28 }
  0x20   :  { %625 = vmatprep.subr.bf16.mxu0 %v680_v0 }
  0x23   :  { %626 = vmatpush3.bf16.msra.mxu0 %v664_v29 }
  0x24   :  { %627 = vmatprep.subr.bf16.mxu0 %v680_v0 }
  0x27   :  { %628 = vmatpush3.bf16.msra.mxu0 %v665_v30 }
  0x28   :  { %629 = vmatprep.subr.bf16.mxu0 %v680_v0 }
  0x2b   :  { %630 = vmatpush3.bf16.msra.mxu0 %v666_v44 }
  0x2c   :  { %631 = vmatprep.subr.bf16.mxu0 %v680_v0 }
  0x2f   :  { %632 = vmatpush3.bf16.msra.mxu0 %v667_v45 }
  0xd2   :  { %v132_v11 = vpop.f32.mrf.mxu0 }
  0xd3   :  { %v133_v12 = vadd.f32 %v525_v10, %v132_v11 }
  0xd4   :  { %v597_v13 = vpop.f32.mrf.mxu0 }
  0xd5   :  { %v531_v14 = vmul.f32 -1.442695, %v133_v12 }
  0xd6   :  { %v135_v15 = vpop.f32.mrf.mxu0 }
  0xd7   :  { %672 = vpow2.f32 %v531_v14 }
  0xd8   :  { %v598_v16 = vpop.f32.mrf.mxu0 }
  0xe4   :  { %v673_v17 = vpop.eup %672 }
  0xe5   :  { %v141_v18 = vadd.f32 1.0, %v673_v17 }
  0xe7   :  { %674 = vrcp.f32 %v141_v18 }
  0xf4   :  { %v675_v20 = vpop.eup %674 }
  0xf5   :  { %vm145_vm2 = vcmp.lt.f32.partialorder %v144_v19, %v675_v20 }
  0xf6   :  { %v532_v21 = vsel %vm145_vm2, 1.0, %v680_v0 }
  0xf7   :  { %v148_v22 = vpack.c.bf16 %v532_v21, %v532_v21 }
  0xf9   :  { %606 = vmatmul.mubr.msk.bf16.vlgmr.msra.gmra.mxu1 %vm180_vm3, %v148_v22 }
  0xfa   :  { %613 = vmatprep.mubr.msk.bf16.mxu1 %vm681_vm0, %v680_v0  ;;  %610 = vmatpush3.bf16.msra.mxu1 %v658_v23 }
  0xfb   :  { %611 = vmatprep.subr.bf16.mxu1 %v680_v0 }
  0xfe   :  { %612 = vmatpush3.bf16.msra.mxu1 %v659_v24 }
  0xff   :  { %637 = vmatprep.subr.bf16.mxu1 %v680_v0 }
 0x1b9   :  { %v218_v32 = vpop.f32.mrf.mxu1 }
 0x1ba   :  { %v219_v33 = vadd.f32 %v533_v31, %v218_v32 }
 0x1bb   :  { %v607_v34 = vpop.f32.mrf.mxu1 }
 0x1bc   :  { %v538_v35 = vmul.f32 -1.442695, %v219_v33 }
 0x1bd   :  { %v221_v36 = vpop.f32.mrf.mxu1 }
 0x1be   :  { %676 = vpow2.f32 %v538_v35 }
 0x1bf   :  { %v608_v37 = vpop.f32.mrf.mxu1 }
 0x1cb   :  { %v677_v38 = vpop.eup %676 }
 0x1cc   :  { %v227_v39 = vadd.f32 1.0, %v677_v38 }
 0x1ce   :  { %678 = vrcp.f32 %v227_v39 }
 0x1db   :  { %v679_v41 = vpop.eup %678 }
 0x1dc   :  { %vm231_vm4 = vcmp.lt.f32.partialorder %v230_v40, %v679_v41 }
 0x1dd   :  { %v539_v42 = vsel %vm231_vm4, 1.0, %v680_v0 }
 0x1de   :  { %v234_v43 = vpack.c.bf16 %v539_v42, %v539_v42 }
 0x1e0   :  { %614 = vmatmul.mubr.msk.bf16.vlgmr.msra.gmra.mxu1 %vm258_vm5, %v234_v43 }
 0x1e1   :  { %645 = vmatprep.mubr.msk.bf16.mxu1 %vm681_vm0, %v680_v0  ;;  %638 = vmatpush3.bf16.msra.mxu1 %v668_v46 }
 0x1e2   :  { %639 = vmatprep.subr.bf16.mxu1 %v680_v0 }
 0x1e5   :  { %640 = vmatpush3.bf16.msra.mxu1 %v669_v47 }
 0x1e6   :  { %641 = vmatprep.subr.bf16.mxu1 %v680_v0 }
 0x1e9   :  { %642 = vmatpush3.bf16.msra.mxu1 %v670_v56 }
 0x1ea   :  { %643 = vmatprep.subr.bf16.mxu1 %v680_v0  ;;  %v20_v0 = vstv %s907_s14 }
 0x1eb   :  { %21 = vst [vmem:[#allocation2] sm:$0x1] %v20_v0 }
 0x1ed   :  { %644 = vmatpush3.bf16.msra.mxu1 %v671_v57 }
 0x1f2   :  { %v560_v13 = vld [vmem:[#allocation2] ss:$0 sm:$0xff] }
 0x2a0   :  { %v296_v49 = vpop.f32.mrf.mxu1 }
 0x2a1   :  { %v297_v50 = vadd.f32 %v540_v48, %v296_v49 }
 0x2a2   :  { %v615_v51 = vpop.f32.mrf.mxu1 }
 0x2a3   :  { %v302_v52 = vmax.f32 %v297_v50, 0.0 }
 0x2a4   :  { %v299_v53 = vpop.f32.mrf.mxu1 }
 0x2a5   :  { %v303_v54 = vpack.c.bf16 %v302_v52, %v302_v52 }
 0x2a6   :  { %v616_v55 = vpop.f32.mrf.mxu1 }
 0x2a7   :  { %634 = vmatmul.mubr.bf16.vlgmr.msra.gmra.mxu0 %v303_v54 }
 0x367   :  { %v409_v59 = vpop.f32.mrf.mxu0 }
 0x368   :  { %v410_v60 = vadd.f32 %v544_v58, %v409_v59 }
 0x369   :  { %v635_v61 = vpop.f32.mrf.mxu0 }
 0x36a   :  { %v415_v62 = vmax.f32 %v410_v60, 0.0 }
 0x36b   :  { %v412_v63 = vpop.f32.mrf.mxu0 }
 0x36c   :  { %v416_v1 = vpack.c.bf16 %v415_v62, %v415_v62 }
 0x36d   :  { %v636_v2 = vpop.f32.mrf.mxu0 }
 0x36e   :  { %646 = vmatmul.mubr.msk.bf16.vlgmr.msra.gmra.mxu1 %vm94_vm1, %v416_v1 }
 0x42e   :  { %v493_v4 = vpop.f32.mrf.mxu1 }
 0x42f   :  { %v494_v5 = vadd.f32 %v553_v3, %v493_v4 }
 0x430   :  { %v647_v6 = vpop.f32.mrf.mxu1 }
 0x431   :  { %v499_v8 = vmax.f32 %v494_v5, 0.0 }
 0x432   :  { %v496_v9 = vpop.f32.mrf.mxu1 }
 0x433   :  { %v507_v10 = vmul.f32 %v559_v7, %v499_v8 }
 0x434   :  { %v648_v11 = vpop.f32.mrf.mxu1 }
 0x435   :  { %v508_v12 = vsel %vm258_vm5, %v507_v10, 0.0 }
 0x436   :  { %509 = vadd.xlane.f32.xlu0 %v508_v12 }
 0x4bf   :  { %v510_v14 = vpop.xlane.xlu0 %509 }
 0x4c0   :  { %v518_v15 = vadd.f32 %v560_v13, %v510_v14 }
 0x4c2   :  { %520 = vst.msk [vmem:[%s910_s15] sm:$0xff] %vm519_vm6, %v518_v15 }

</bundles_post_ra>
